<compile_context>
chip_gen: v7x
topology: tpu7x:2x2x1
jax: 0.10.0
libtpu: 0.0.40
codegen_flags: <defaults>
</compile_context>

<pallas_src>
import functools
import math

import jax
import jax.numpy as jnp
from jax import lax
from jax.experimental import pallas as pl
from jax.experimental.pallas import tpu as pltpu

LANE = 128
_SUBLANE = 8
_MAX_BLOCK_BYTES = 1 << 20  # per-input-block VMEM budget (v7x-safe headroom)


# ---------------------------------------------------------------------------
# trace-time helpers (t1 / t2 / smoothing are Python floats -> branch at trace)
# ---------------------------------------------------------------------------
def _pow_opt(x, e):
    """jnp.power with rationalised common exponents (sqrt/rsqrt/recip + muls)."""
    e = float(e)
    if e == 0.0:
        return jnp.ones_like(x)
    if e == 1.0:
        return x
    if e == 2.0:
        return x * x
    if e == 3.0:
        return x * x * x
    if e == 0.5:
        return jnp.sqrt(x)
    if e == 1.5:
        return x * jnp.sqrt(x)
    if e == -0.5:
        return lax.rsqrt(x)
    if e == -1.0:
        return 1.0 / x
    if e == -2.0:
        r = 1.0 / x
        return r * r
    return jnp.power(x, e)


def _exp_t(u, t):
    if t == 1.0:
        return jnp.exp(u)
    return _pow_opt(jnp.maximum(1.0 + (1.0 - t) * u, 0.0), 1.0 / (1.0 - t))


def _neg_log_t_recip(u, t):
    """-log_t(1/u, t) == (u**(t-1) - 1) / (t - 1)  (avoids the reciprocal)."""
    if t == 1.0:
        return jnp.log(u)
    return (_pow_opt(u, t - 1.0) - 1.0) / (t - 1.0)


def _labconst_py(v, t1):
    """v*log_t(v+1e-10, t1) - v**(2-t1)/(2-t1) as a trace-time Python float."""
    ve = v + 1e-10
    if t1 == 1.0:
        lt = math.log(ve)
    else:
        lt = (ve ** (1.0 - t1) - 1.0) / (1.0 - t1)
    return v * lt - (v ** (2.0 - t1)) / (2.0 - t1)


# ---------------------------------------------------------------------------
# Pallas kernel factory
# ---------------------------------------------------------------------------
def _make_kernel(*, t1, t2, smoothing, num_iters, num_classes, n_valid,
                 tile_r, total_slots, labels_are_int, ignore_index, want_map):
    C = num_classes
    one_m_t1 = 1.0 - t1
    two_m_t1 = 2.0 - t1
    inv_2mt1 = 1.0 / two_m_t1
    if smoothing > 0.0:
        factor = 1.0 - smoothing * C / (C - 1.0)
        add = smoothing / (C - 1.0)
    else:
        factor, add = 1.0, 0.0
    v_hit = factor * 1.0 + add
    v_miss = add
    # Label-only part of the loss is a constant for (in-range) hard labels.
    lab_const = _labconst_py(v_hit, t1) + (C - 1) * _labconst_py(v_miss, t1)
    needs_mask = (not want_map) and (total_slots != n_valid)

    def kernel(pred_ref, lab_ref, out_ref):
        # activations, one [tile_r, 128] tile per class
        a = [pred_ref[c].astype(jnp.float32) for c in range(C)]

        # ---------------- tempered softmax over the unrolled class axis ----
        mu = a[0]
        for c in range(1, C):
            mu = jnp.maximum(mu, a[c])
        na = [a[c] - mu for c in range(C)]

        if t2 == 1.0:
            e = [jnp.exp(x) for x in na]
            s = e[0]
            for c in range(1, C):
                s = s + e[c]
            inv = 1.0 / s
            probs = [e[c] * inv for c in range(C)]
        elif t2 < 1.0:
            # binary-search normalization (finite support)
            thresh = -1.0 / (1.0 - t2)
            eff = (na[0] > thresh).astype(jnp.float32)
            for c in range(1, C):
                eff = eff + (na[c] > thresh).astype(jnp.float32)
            lower = jnp.zeros_like(mu)
            upper = _neg_log_t_recip(eff, t2)
            logt_part = lower
            for _ in range(num_iters):
                logt_part = (upper + lower) * 0.5
                sp = _exp_t(na[0] - logt_part, t2)
                for c in range(1, C):
                    sp = sp + _exp_t(na[c] - logt_part, t2)
                upd = (sp < 1.0).astype(jnp.float32)
                lower = lower * upd + (1.0 - upd) * logt_part
                upper = upper * (1.0 - upd) + upd * logt_part
            logt_part = (upper + lower) * 0.5
            probs = [_exp_t(na[c] - logt_part, t2) for c in range(C)]
        else:
            # fixed-point normalization (heavy tails)
            m = list(na)
            for _ in range(num_iters):
                zt = _exp_t(m[0], t2)
                for c in range(1, C):
                    zt = zt + _exp_t(m[c], t2)
                scale = _pow_opt(zt, 1.0 - t2)
                m = [na[c] * scale for c in range(C)]
            zt = _exp_t(m[0], t2)
            for c in range(1, C):
                zt = zt + _exp_t(m[c], t2)
            logt_part = _neg_log_t_recip(zt, t2)
            probs = [_exp_t(na[c] - logt_part, t2) for c in range(C)]

        # ---------------- probability-side loss terms (shared powers) -------
        if t1 == 1.0:
            logt_p = [jnp.log(probs[c]) for c in range(C)]
            p_term = probs                                  # p^(2-1)/(2-1) = p
        else:
            p_pow = [_pow_opt(probs[c], one_m_t1) for c in range(C)]
            logt_p = [(p_pow[c] - 1.0) * (1.0 / one_m_t1) for c in range(C)]
            p_term = [probs[c] * p_pow[c] * inv_2mt1 for c in range(C)]

        # ---------------- label-side terms + class sum ----------------------
        if labels_are_int:
            tgt = lab_ref[...]
            loss = jnp.full_like(mu, lab_const)
            for c in range(C):
                lab_c = jnp.where(tgt == c, v_hit, v_miss)
                loss = loss - lab_c * logt_p[c] + p_term[c]
        else:
            loss = jnp.zeros_like(mu)
            for c in range(C):
                lab = lab_ref[c].astype(jnp.float32)
                if smoothing > 0.0:
                    lab = factor * lab + add
                if t1 == 1.0:
                    lab_term = lab * jnp.log(lab + 1e-10) - lab
                else:
                    lab_pow = _pow_opt(lab + 1e-10, one_m_t1)
                    logt_lab = (lab_pow - 1.0) * (1.0 / one_m_t1)
                    lab_term = lab * logt_lab - _pow_opt(lab, two_m_t1) * inv_2mt1
                loss = loss + lab_term - lab * logt_p[c] + p_term[c]

        if (ignore_index is not None) and labels_are_int:
            loss = jnp.where(tgt == ignore_index, 0.0, loss)

        if want_map:
            out_ref[...] = loss
        else:
            if needs_mask:
                rows = lax.broadcasted_iota(jnp.int32, (tile_r, LANE), 0)
                lanes = lax.broadcasted_iota(jnp.int32, (tile_r, LANE), 1)
                gidx = (pl.program_id(0) * tile_r + rows) * LANE + lanes
                loss = jnp.where(gidx < n_valid, loss, 0.0)
            # per-vreg partial sums -> one lane-dense [8, 128] tile per block
            out_ref[...] = jnp.sum(
                loss.reshape(tile_r // _SUBLANE, _SUBLANE, LANE), axis=0)

    return kernel


# ---------------------------------------------------------------------------
# Wrapper (glue: layout, padding, tile selection, final scalar reduction)
# ---------------------------------------------------------------------------
class BiTemperedLogisticLoss:
    def __init__(self, t1, t2, smoothing=0.0, ignore_index=None,
                 reduction="mean", num_iters=5, max_tile_rows=512):
        self.t1 = float(t1)
        self.t2 = float(t2)
        self.smoothing = float(smoothing)
        self.ignore_index = ignore_index
        self.reduction = reduction
        self.num_iters = int(num_iters)
        self.max_tile_rows = int(max_tile_rows)

    @functools.partial(jax.jit, static_argnums=(0,))
    def __call__(self, predictions, targets):
        C = predictions.shape[-1]
        if C < 2:
            raise ValueError("last dim of predictions must be num_classes >= 2")
        labels_are_int = targets.ndim == predictions.ndim - 1
        if (not labels_are_int) and targets.shape != predictions.shape:
            raise ValueError("targets must be class indices or one-hot like predictions")
        if (self.ignore_index is not None) and not labels_are_int:
            # TODO(synk): PyTorch's `loss *= ~targets.eq(ignore_index)` broadcast is
            # ill-defined for same-shape (one-hot) targets; only int targets supported.
            raise NotImplementedError("ignore_index requires integer class targets")

        n = math.prod(predictions.shape[:-1]) if predictions.ndim > 1 else 1
        rows = -(-n // LANE)

        # Tile size: as large as possible while keeping each input block small
        # enough for double-buffered pipelining within the 32 MiB scoped VMEM.
        bytes_per_row = C * LANE * 4
        cap_rows = max(_SUBLANE,
                       (_MAX_BLOCK_BYTES // bytes_per_row) // _SUBLANE * _SUBLANE)
        tile_r = max(_SUBLANE, min(self.max_tile_rows, cap_rows))
        if rows <= tile_r:
            tile_r = max(_SUBLANE, -(-rows // _SUBLANE) * _SUBLANE)
        rows_pad = -(-rows // tile_r) * tile_r
        num_tiles = rows_pad // tile_r
        total_slots = rows_pad * LANE
        pad = total_slots - n

        # predictions -> class-major, lane-dense [C, rows_pad, 128]
        p = jnp.moveaxis(predictions.astype(jnp.float32), -1, 0).reshape(C, n)
        p = jnp.pad(p, ((0, 0), (0, pad))).reshape(C, rows_pad, LANE)
        pred_spec = pl.BlockSpec((C, tile_r, LANE), lambda i: (0, i, 0))

        if labels_are_int:
            lab = jnp.pad(targets.reshape(n).astype(jnp.int32), (0, pad))
            lab = lab.reshape(rows_pad, LANE)
            lab_spec = pl.BlockSpec((tile_r, LANE), lambda i: (i, 0))
        else:
            lab = jnp.moveaxis(targets.astype(jnp.float32), -1, 0).reshape(C, n)
            lab = jnp.pad(lab, ((0, 0), (0, pad))).reshape(C, rows_pad, LANE)
            lab_spec = pl.BlockSpec((C, tile_r, LANE), lambda i: (0, i, 0))

        want_map = self.reduction not in ("mean", "sum")

        kernel = _make_kernel(
            t1=self.t1, t2=self.t2, smoothing=self.smoothing,
            num_iters=self.num_iters, num_classes=C, n_valid=n,
            tile_r=tile_r, total_slots=total_slots,
            labels_are_int=labels_are_int, ignore_index=self.ignore_index,
            want_map=want_map)

        if want_map:
            out_shape = jax.ShapeDtypeStruct((rows_pad, LANE), jnp.float32)
            out_spec = pl.BlockSpec((tile_r, LANE), lambda i: (i, 0))
        else:
            out_shape = jax.ShapeDtypeStruct((num_tiles * _SUBLANE, LANE), jnp.float32)
            out_spec = pl.BlockSpec((_SUBLANE, LANE), lambda i: (i, 0))

        out = pl.pallas_call(
            kernel,
            grid=(num_tiles,),
            in_specs=[pred_spec, lab_spec],
            out_specs=out_spec,
            out_shape=out_shape,
            compiler_params=pltpu.CompilerParams(
                dimension_semantics=("parallel",),
                vmem_limit_bytes=32 * 1024 * 1024),
        )(p, lab)

        if self.reduction == "mean":
            return jnp.sum(out) / n
        if self.reduction == "sum":
            return jnp.sum(out)
        # 'none': per-pixel loss with shape predictions.shape[:-1]
        return (out.reshape(-1)[:n]
                .reshape(predictions.shape[:-1])
                .astype(predictions.dtype))


# ---------------------------------------------------------------------------
# Pure-JAX reference (mirrors the PyTorch code) for sanity checking
# ---------------------------------------------------------------------------
def _log_t_ref(u, t):
    if t == 1.0:
        return jnp.log(u)
    return (jnp.power(u, 1.0 - t) - 1.0) / (1.0 - t)


def _exp_t_ref(u, t):
    if t == 1.0:
        return jnp.exp(u)
    return jnp.power(jnp.maximum(1.0 + (1.0 - t) * u, 0.0), 1.0 / (1.0 - t))


def _reference(predictions, targets, t1, t2, smoothing, ignore_index,
               reduction, num_iters=5):
    acts = predictions.astype(jnp.float32)
    C = acts.shape[-1]
    if targets.ndim < acts.ndim:
        labs = jax.nn.one_hot(targets, C, dtype=jnp.float32)
    else:
        labs = targets.astype(jnp.float32)
    if smoothing > 0:
        labs = (1.0 - smoothing * C / (C - 1)) * labs + smoothing / (C - 1)

    mu = jnp.max(acts, -1, keepdims=True)
    na = acts - mu
    if t2 == 1.0:
        probs = jax.nn.softmax(acts, axis=-1)
    elif t2 < 1.0:
        eff = jnp.sum((na > -1.0 / (1.0 - t2)).astype(jnp.float32), -1, keepdims=True)
        lower = jnp.zeros_like(mu)
        upper = -_log_t_ref(1.0 / eff, t2) * jnp.ones_like(lower)
        for _ in range(num_iters):
            mid = (upper + lower) / 2.0
            sp = jnp.sum(_exp_t_ref(na - mid, t2), -1, keepdims=True)
            upd = (sp < 1.0).astype(jnp.float32)
            lower = lower * upd + (1.0 - upd) * mid
            upper = upper * (1.0 - upd) + upd * mid
        norm = (upper + lower) / 2.0 + mu
        probs = _exp_t_ref(acts - norm, t2)
    else:
        m = na
        for _ in range(num_iters):
            zt = jnp.sum(_exp_t_ref(m, t2), -1, keepdims=True)
            m = na * jnp.power(zt, 1.0 - t2)
        zt = jnp.sum(_exp_t_ref(m, t2), -1, keepdims=True)
        norm = -_log_t_ref(1.0 / zt, t2) + mu
        probs = _exp_t_ref(acts - norm, t2)

    lv = (labs * _log_t_ref(labs + 1e-10, t1) - labs * _log_t_ref(probs, t1)
          - jnp.power(labs, 2.0 - t1) / (2.0 - t1)
          + jnp.power(probs, 2.0 - t1) / (2.0 - t1))
    loss = jnp.sum(lv, -1)
    if ignore_index is not None:
        loss = loss * (targets != ignore_index).astype(loss.dtype)
    if reduction == "mean":
        return jnp.mean(loss)
    if reduction == "sum":
        return jnp.sum(loss)
    return loss


if __name__ == "__main__":
    key = jax.random.PRNGKey(0)
    k1, k2, k3, k4, k5, k6 = jax.random.split(key, 6)

    # --- Test 1: [N, C] logits, integer targets, mean reduction, t2 > 1 -----
    N, C = 2 * 16 * 16, 4
    preds = jax.random.normal(k1, (N, C), dtype=jnp.float32) * 2.0
    tgt = jax.random.randint(k2, (N,), 0, C, dtype=jnp.int32)
    loss_fn = BiTemperedLogisticLoss(t1=0.5, t2=1.5, smoothing=0.01,
                                     ignore_index=None, reduction="mean")
    out1 = jax.block_until_ready(loss_fn(preds, tgt))
    ref1 = _reference(preds, tgt, 0.5, 1.5, 0.01, None, "mean")
    assert jnp.allclose(out1, ref1, rtol=2e-4, atol=1e-4), (out1, ref1)

    # --- Test 2: t2 < 1 (binary-search branch), ignore_index, sum reduction -
    loss_fn2 = BiTemperedLogisticLoss(t1=0.8, t2=0.7, smoothing=0.0,
                                      ignore_index=2, reduction="sum")
    out2 = jax.block_until_ready(loss_fn2(preds, tgt))
    ref2 = _reference(preds, tgt, 0.8, 0.7, 0.0, 2, "sum")
    assert jnp.allclose(out2, ref2, rtol=5e-4, atol=1e-2), (out2, ref2)

    # --- Test 3: 4-D activations with one-hot targets, reduction='none' -----
    preds3 = jax.random.normal(k3, (2, 16, 16, 4), dtype=jnp.float32) * 2.0
    idx3 = jax.random.randint(k4, (2, 16, 16), 0, 4, dtype=jnp.int32)
    onehot3 = jax.nn.one_hot(idx3, 4, dtype=jnp.float32)
    loss_fn3 = BiTemperedLogisticLoss(t1=0.5, t2=1.5, smoothing=0.0,
                                      ignore_index=None, reduction="none")
    out3 = jax.block_until_ready(loss_fn3(preds3, onehot3))
    ref3 = _reference(preds3, onehot3, 0.5, 1.5, 0.0, None, "none")
    assert out3.shape == ref3.shape
    assert jnp.allclose(out3, ref3, rtol=2e-4, atol=1e-4), \
        float(jnp.max(jnp.abs(out3 - ref3)))

    # --- Test 4: force a multi-tile parallel grid with a small tile ---------
    N4, C4 = 4 * 32 * 32, 3
    preds4 = jax.random.normal(k5, (N4, C4), dtype=jnp.float32)
    tgt4 = jax.random.randint(k6, (N4,), 0, C4, dtype=jnp.int32)
    loss_fn4 = BiTemperedLogisticLoss(t1=0.5, t2=1.5, smoothing=0.01,
                                      ignore_index=None, reduction="mean",
                                      max_tile_rows=8)
    out4 = jax.block_until_ready(loss_fn4(preds4, tgt4))
    ref4 = _reference(preds4, tgt4, 0.5, 1.5, 0.01, None, "mean")
    assert jnp.allclose(out4, ref4, rtol=2e-4, atol=1e-4), (out4, ref4)

    print("KERNEL_OK")
</pallas_src>

<mosaic_0001>
module attributes {stable_mosaic.version = 11 : i64} {
  func.func @kernel(%arg0: i32, %arg1: memref<4x8x128xf32, #tpu.memory_space<vmem>>, %arg2: memref<8x128xi32, #tpu.memory_space<vmem>>, %arg3: memref<8x128xf32, #tpu.memory_space<vmem>>) attributes {dimension_semantics = [#tpu.dimension_semantics<parallel>], iteration_bounds = array<i64: 1>, scalar_prefetch = 0 : i64, scratch_operands = 0 : i64, tpu.core_type = #tpu.core_type<tc>, window_params = [{transform_indices = @transform_0, window_bounds = array<i64: 4, 8, 128>}, {transform_indices = @transform_1, window_bounds = array<i64: 8, 128>}, {transform_indices = @transform_2, window_bounds = array<i64: 8, 128>}]} {
    %c0 = arith.constant 0 : index
    %c0_0 = arith.constant 0 : index
    %c0_1 = arith.constant 0 : index
    %0 = vector.load %arg1[%c0, %c0_0, %c0_1] : memref<4x8x128xf32, #tpu.memory_space<vmem>>, vector<1x8x128xf32>
    %1 = vector.shape_cast %0 : vector<1x8x128xf32> to vector<8x128xf32>
    %c1 = arith.constant 1 : index
    %c0_2 = arith.constant 0 : index
    %c0_3 = arith.constant 0 : index
    %2 = vector.load %arg1[%c1, %c0_2, %c0_3] : memref<4x8x128xf32, #tpu.memory_space<vmem>>, vector<1x8x128xf32>
    %3 = vector.shape_cast %2 : vector<1x8x128xf32> to vector<8x128xf32>
    %c2 = arith.constant 2 : index
    %c0_4 = arith.constant 0 : index
    %c0_5 = arith.constant 0 : index
    %4 = vector.load %arg1[%c2, %c0_4, %c0_5] : memref<4x8x128xf32, #tpu.memory_space<vmem>>, vector<1x8x128xf32>
    %5 = vector.shape_cast %4 : vector<1x8x128xf32> to vector<8x128xf32>
    %c3 = arith.constant 3 : index
    %c0_6 = arith.constant 0 : index
    %c0_7 = arith.constant 0 : index
    %6 = vector.load %arg1[%c3, %c0_6, %c0_7] : memref<4x8x128xf32, #tpu.memory_space<vmem>>, vector<1x8x128xf32>
    %7 = vector.shape_cast %6 : vector<1x8x128xf32> to vector<8x128xf32>
    %8 = arith.maximumf %1, %3 : vector<8x128xf32>
    %9 = arith.maximumf %8, %5 : vector<8x128xf32>
    %10 = arith.maximumf %9, %7 : vector<8x128xf32>
    %11 = arith.subf %1, %10 : vector<8x128xf32>
    %12 = arith.subf %3, %10 : vector<8x128xf32>
    %13 = arith.subf %5, %10 : vector<8x128xf32>
    %14 = arith.subf %7, %10 : vector<8x128xf32>
    %cst = arith.constant -5.000000e-01 : f32
    %15 = vector.broadcast %cst : f32 to vector<8x128xf32>
    %16 = arith.mulf %15, %11 : vector<8x128xf32>
    %cst_8 = arith.constant 1.000000e+00 : f32
    %17 = vector.broadcast %cst_8 : f32 to vector<8x128xf32>
    %18 = arith.addf %17, %16 : vector<8x128xf32>
    %cst_9 = arith.constant 0.000000e+00 : f32
    %19 = vector.broadcast %cst_9 : f32 to vector<8x128xf32>
    %20 = arith.maximumf %18, %19 : vector<8x128xf32>
    %cst_10 = arith.constant 1.000000e+00 : f32
    %21 = vector.broadcast %cst_10 : f32 to vector<8x128xf32>
    %22 = arith.divf %21, %20 : vector<8x128xf32>
    %23 = arith.mulf %22, %22 : vector<8x128xf32>
    %cst_11 = arith.constant -5.000000e-01 : f32
    %24 = vector.broadcast %cst_11 : f32 to vector<8x128xf32>
    %25 = arith.mulf %24, %12 : vector<8x128xf32>
    %cst_12 = arith.constant 1.000000e+00 : f32
    %26 = vector.broadcast %cst_12 : f32 to vector<8x128xf32>
    %27 = arith.addf %26, %25 : vector<8x128xf32>
    %cst_13 = arith.constant 0.000000e+00 : f32
    %28 = vector.broadcast %cst_13 : f32 to vector<8x128xf32>
    %29 = arith.maximumf %27, %28 : vector<8x128xf32>
    %cst_14 = arith.constant 1.000000e+00 : f32
    %30 = vector.broadcast %cst_14 : f32 to vector<8x128xf32>
    %31 = arith.divf %30, %29 : vector<8x128xf32>
    %32 = arith.mulf %31, %31 : vector<8x128xf32>
    %33 = arith.addf %23, %32 : vector<8x128xf32>
    %cst_15 = arith.constant -5.000000e-01 : f32
    %34 = vector.broadcast %cst_15 : f32 to vector<8x128xf32>
    %35 = arith.mulf %34, %13 : vector<8x128xf32>
    %cst_16 = arith.constant 1.000000e+00 : f32
    %36 = vector.broadcast %cst_16 : f32 to vector<8x128xf32>
    %37 = arith.addf %36, %35 : vector<8x128xf32>
    %cst_17 = arith.constant 0.000000e+00 : f32
    %38 = vector.broadcast %cst_17 : f32 to vector<8x128xf32>
    %39 = arith.maximumf %37, %38 : vector<8x128xf32>
    %cst_18 = arith.constant 1.000000e+00 : f32
    %40 = vector.broadcast %cst_18 : f32 to vector<8x128xf32>
    %41 = arith.divf %40, %39 : vector<8x128xf32>
    %42 = arith.mulf %41, %41 : vector<8x128xf32>
    %43 = arith.addf %33, %42 : vector<8x128xf32>
    %cst_19 = arith.constant -5.000000e-01 : f32
    %44 = vector.broadcast %cst_19 : f32 to vector<8x128xf32>
    %45 = arith.mulf %44, %14 : vector<8x128xf32>
    %cst_20 = arith.constant 1.000000e+00 : f32
    %46 = vector.broadcast %cst_20 : f32 to vector<8x128xf32>
    %47 = arith.addf %46, %45 : vector<8x128xf32>
    %cst_21 = arith.constant 0.000000e+00 : f32
    %48 = vector.broadcast %cst_21 : f32 to vector<8x128xf32>
    %49 = arith.maximumf %47, %48 : vector<8x128xf32>
    %cst_22 = arith.constant 1.000000e+00 : f32
    %50 = vector.broadcast %cst_22 : f32 to vector<8x128xf32>
    %51 = arith.divf %50, %49 : vector<8x128xf32>
    %52 = arith.mulf %51, %51 : vector<8x128xf32>
    %53 = arith.addf %43, %52 : vector<8x128xf32>
    %54 = math.rsqrt %53 : vector<8x128xf32>
    %55 = arith.mulf %11, %54 : vector<8x128xf32>
    %56 = arith.mulf %12, %54 : vector<8x128xf32>
    %57 = arith.mulf %13, %54 : vector<8x128xf32>
    %58 = arith.mulf %14, %54 : vector<8x128xf32>
    %cst_23 = arith.constant -5.000000e-01 : f32
    %59 = vector.broadcast %cst_23 : f32 to vector<8x128xf32>
    %60 = arith.mulf %59, %55 : vector<8x128xf32>
    %cst_24 = arith.constant 1.000000e+00 : f32
    %61 = vector.broadcast %cst_24 : f32 to vector<8x128xf32>
    %62 = arith.addf %61, %60 : vector<8x128xf32>
    %cst_25 = arith.constant 0.000000e+00 : f32
    %63 = vector.broadcast %cst_25 : f32 to vector<8x128xf32>
    %64 = arith.maximumf %62, %63 : vector<8x128xf32>
    %cst_26 = arith.constant 1.000000e+00 : f32
    %65 = vector.broadcast %cst_26 : f32 to vector<8x128xf32>
    %66 = arith.divf %65, %64 : vector<8x128xf32>
    %67 = arith.mulf %66, %66 : vector<8x128xf32>
    %cst_27 = arith.constant -5.000000e-01 : f32
    %68 = vector.broadcast %cst_27 : f32 to vector<8x128xf32>
    %69 = arith.mulf %68, %56 : vector<8x128xf32>
    %cst_28 = arith.constant 1.000000e+00 : f32
    %70 = vector.broadcast %cst_28 : f32 to vector<8x128xf32>
    %71 = arith.addf %70, %69 : vector<8x128xf32>
    %cst_29 = arith.constant 0.000000e+00 : f32
    %72 = vector.broadcast %cst_29 : f32 to vector<8x128xf32>
    %73 = arith.maximumf %71, %72 : vector<8x128xf32>
    %cst_30 = arith.constant 1.000000e+00 : f32
    %74 = vector.broadcast %cst_30 : f32 to vector<8x128xf32>
    %75 = arith.divf %74, %73 : vector<8x128xf32>
    %76 = arith.mulf %75, %75 : vector<8x128xf32>
    %77 = arith.addf %67, %76 : vector<8x128xf32>
    %cst_31 = arith.constant -5.000000e-01 : f32
    %78 = vector.broadcast %cst_31 : f32 to vector<8x128xf32>
    %79 = arith.mulf %78, %57 : vector<8x128xf32>
    %cst_32 = arith.constant 1.000000e+00 : f32
    %80 = vector.broadcast %cst_32 : f32 to vector<8x128xf32>
    %81 = arith.addf %80, %79 : vector<8x128xf32>
    %cst_33 = arith.constant 0.000000e+00 : f32
    %82 = vector.broadcast %cst_33 : f32 to vector<8x128xf32>
    %83 = arith.maximumf %81, %82 : vector<8x128xf32>
    %cst_34 = arith.constant 1.000000e+00 : f32
    %84 = vector.broadcast %cst_34 : f32 to vector<8x128xf32>
    %85 = arith.divf %84, %83 : vector<8x128xf32>
    %86 = arith.mulf %85, %85 : vector<8x128xf32>
    %87 = arith.addf %77, %86 : vector<8x128xf32>
    %cst_35 = arith.constant -5.000000e-01 : f32
    %88 = vector.broadcast %cst_35 : f32 to vector<8x128xf32>
    %89 = arith.mulf %88, %58 : vector<8x128xf32>
    %cst_36 = arith.constant 1.000000e+00 : f32
    %90 = vector.broadcast %cst_36 : f32 to vector<8x128xf32>
    %91 = arith.addf %90, %89 : vector<8x128xf32>
    %cst_37 = arith.constant 0.000000e+00 : f32
    %92 = vector.broadcast %cst_37 : f32 to vector<8x128xf32>
    %93 = arith.maximumf %91, %92 : vector<8x128xf32>
    %cst_38 = arith.constant 1.000000e+00 : f32
    %94 = vector.broadcast %cst_38 : f32 to vector<8x128xf32>
    %95 = arith.divf %94, %93 : vector<8x128xf32>
    %96 = arith.mulf %95, %95 : vector<8x128xf32>
    %97 = arith.addf %87, %96 : vector<8x128xf32>
    %98 = math.rsqrt %97 : vector<8x128xf32>
    %99 = arith.mulf %11, %98 : vector<8x128xf32>
    %100 = arith.mulf %12, %98 : vector<8x128xf32>
    %101 = arith.mulf %13, %98 : vector<8x128xf32>
    %102 = arith.mulf %14, %98 : vector<8x128xf32>
    %cst_39 = arith.constant -5.000000e-01 : f32
    %103 = vector.broadcast %cst_39 : f32 to vector<8x128xf32>
    %104 = arith.mulf %103, %99 : vector<8x128xf32>
    %cst_40 = arith.constant 1.000000e+00 : f32
    %105 = vector.broadcast %cst_40 : f32 to vector<8x128xf32>
    %106 = arith.addf %105, %104 : vector<8x128xf32>
    %cst_41 = arith.constant 0.000000e+00 : f32
    %107 = vector.broadcast %cst_41 : f32 to vector<8x128xf32>
    %108 = arith.maximumf %106, %107 : vector<8x128xf32>
    %cst_42 = arith.constant 1.000000e+00 : f32
    %109 = vector.broadcast %cst_42 : f32 to vector<8x128xf32>
    %110 = arith.divf %109, %108 : vector<8x128xf32>
    %111 = arith.mulf %110, %110 : vector<8x128xf32>
    %cst_43 = arith.constant -5.000000e-01 : f32
    %112 = vector.broadcast %cst_43 : f32 to vector<8x128xf32>
    %113 = arith.mulf %112, %100 : vector<8x128xf32>
    %cst_44 = arith.constant 1.000000e+00 : f32
    %114 = vector.broadcast %cst_44 : f32 to vector<8x128xf32>
    %115 = arith.addf %114, %113 : vector<8x128xf32>
    %cst_45 = arith.constant 0.000000e+00 : f32
    %116 = vector.broadcast %cst_45 : f32 to vector<8x128xf32>
    %117 = arith.maximumf %115, %116 : vector<8x128xf32>
    %cst_46 = arith.constant 1.000000e+00 : f32
    %118 = vector.broadcast %cst_46 : f32 to vector<8x128xf32>
    %119 = arith.divf %118, %117 : vector<8x128xf32>
    %120 = arith.mulf %119, %119 : vector<8x128xf32>
    %121 = arith.addf %111, %120 : vector<8x128xf32>
    %cst_47 = arith.constant -5.000000e-01 : f32
    %122 = vector.broadcast %cst_47 : f32 to vector<8x128xf32>
    %123 = arith.mulf %122, %101 : vector<8x128xf32>
    %cst_48 = arith.constant 1.000000e+00 : f32
    %124 = vector.broadcast %cst_48 : f32 to vector<8x128xf32>
    %125 = arith.addf %124, %123 : vector<8x128xf32>
    %cst_49 = arith.constant 0.000000e+00 : f32
    %126 = vector.broadcast %cst_49 : f32 to vector<8x128xf32>
    %127 = arith.maximumf %125, %126 : vector<8x128xf32>
    %cst_50 = arith.constant 1.000000e+00 : f32
    %128 = vector.broadcast %cst_50 : f32 to vector<8x128xf32>
    %129 = arith.divf %128, %127 : vector<8x128xf32>
    %130 = arith.mulf %129, %129 : vector<8x128xf32>
    %131 = arith.addf %121, %130 : vector<8x128xf32>
    %cst_51 = arith.constant -5.000000e-01 : f32
    %132 = vector.broadcast %cst_51 : f32 to vector<8x128xf32>
    %133 = arith.mulf %132, %102 : vector<8x128xf32>
    %cst_52 = arith.constant 1.000000e+00 : f32
    %134 = vector.broadcast %cst_52 : f32 to vector<8x128xf32>
    %135 = arith.addf %134, %133 : vector<8x128xf32>
    %cst_53 = arith.constant 0.000000e+00 : f32
    %136 = vector.broadcast %cst_53 : f32 to vector<8x128xf32>
    %137 = arith.maximumf %135, %136 : vector<8x128xf32>
    %cst_54 = arith.constant 1.000000e+00 : f32
    %138 = vector.broadcast %cst_54 : f32 to vector<8x128xf32>
    %139 = arith.divf %138, %137 : vector<8x128xf32>
    %140 = arith.mulf %139, %139 : vector<8x128xf32>
    %141 = arith.addf %131, %140 : vector<8x128xf32>
    %142 = math.rsqrt %141 : vector<8x128xf32>
    %143 = arith.mulf %11, %142 : vector<8x128xf32>
    %144 = arith.mulf %12, %142 : vector<8x128xf32>
    %145 = arith.mulf %13, %142 : vector<8x128xf32>
    %146 = arith.mulf %14, %142 : vector<8x128xf32>
    %cst_55 = arith.constant -5.000000e-01 : f32
    %147 = vector.broadcast %cst_55 : f32 to vector<8x128xf32>
    %148 = arith.mulf %147, %143 : vector<8x128xf32>
    %cst_56 = arith.constant 1.000000e+00 : f32
    %149 = vector.broadcast %cst_56 : f32 to vector<8x128xf32>
    %150 = arith.addf %149, %148 : vector<8x128xf32>
    %cst_57 = arith.constant 0.000000e+00 : f32
    %151 = vector.broadcast %cst_57 : f32 to vector<8x128xf32>
    %152 = arith.maximumf %150, %151 : vector<8x128xf32>
    %cst_58 = arith.constant 1.000000e+00 : f32
    %153 = vector.broadcast %cst_58 : f32 to vector<8x128xf32>
    %154 = arith.divf %153, %152 : vector<8x128xf32>
    %155 = arith.mulf %154, %154 : vector<8x128xf32>
    %cst_59 = arith.constant -5.000000e-01 : f32
    %156 = vector.broadcast %cst_59 : f32 to vector<8x128xf32>
    %157 = arith.mulf %156, %144 : vector<8x128xf32>
    %cst_60 = arith.constant 1.000000e+00 : f32
    %158 = vector.broadcast %cst_60 : f32 to vector<8x128xf32>
    %159 = arith.addf %158, %157 : vector<8x128xf32>
    %cst_61 = arith.constant 0.000000e+00 : f32
    %160 = vector.broadcast %cst_61 : f32 to vector<8x128xf32>
    %161 = arith.maximumf %159, %160 : vector<8x128xf32>
    %cst_62 = arith.constant 1.000000e+00 : f32
    %162 = vector.broadcast %cst_62 : f32 to vector<8x128xf32>
    %163 = arith.divf %162, %161 : vector<8x128xf32>
    %164 = arith.mulf %163, %163 : vector<8x128xf32>
    %165 = arith.addf %155, %164 : vector<8x128xf32>
    %cst_63 = arith.constant -5.000000e-01 : f32
    %166 = vector.broadcast %cst_63 : f32 to vector<8x128xf32>
    %167 = arith.mulf %166, %145 : vector<8x128xf32>
    %cst_64 = arith.constant 1.000000e+00 : f32
    %168 = vector.broadcast %cst_64 : f32 to vector<8x128xf32>
    %169 = arith.addf %168, %167 : vector<8x128xf32>
    %cst_65 = arith.constant 0.000000e+00 : f32
    %170 = vector.broadcast %cst_65 : f32 to vector<8x128xf32>
    %171 = arith.maximumf %169, %170 : vector<8x128xf32>
    %cst_66 = arith.constant 1.000000e+00 : f32
    %172 = vector.broadcast %cst_66 : f32 to vector<8x128xf32>
    %173 = arith.divf %172, %171 : vector<8x128xf32>
    %174 = arith.mulf %173, %173 : vector<8x128xf32>
    %175 = arith.addf %165, %174 : vector<8x128xf32>
    %cst_67 = arith.constant -5.000000e-01 : f32
    %176 = vector.broadcast %cst_67 : f32 to vector<8x128xf32>
    %177 = arith.mulf %176, %146 : vector<8x128xf32>
    %cst_68 = arith.constant 1.000000e+00 : f32
    %178 = vector.broadcast %cst_68 : f32 to vector<8x128xf32>
    %179 = arith.addf %178, %177 : vector<8x128xf32>
    %cst_69 = arith.constant 0.000000e+00 : f32
    %180 = vector.broadcast %cst_69 : f32 to vector<8x128xf32>
    %181 = arith.maximumf %179, %180 : vector<8x128xf32>
    %cst_70 = arith.constant 1.000000e+00 : f32
    %182 = vector.broadcast %cst_70 : f32 to vector<8x128xf32>
    %183 = arith.divf %182, %181 : vector<8x128xf32>
    %184 = arith.mulf %183, %183 : vector<8x128xf32>
    %185 = arith.addf %175, %184 : vector<8x128xf32>
    %186 = math.rsqrt %185 : vector<8x128xf32>
    %187 = arith.mulf %11, %186 : vector<8x128xf32>
    %188 = arith.mulf %12, %186 : vector<8x128xf32>
    %189 = arith.mulf %13, %186 : vector<8x128xf32>
    %190 = arith.mulf %14, %186 : vector<8x128xf32>
    %cst_71 = arith.constant -5.000000e-01 : f32
    %191 = vector.broadcast %cst_71 : f32 to vector<8x128xf32>
    %192 = arith.mulf %191, %187 : vector<8x128xf32>
    %cst_72 = arith.constant 1.000000e+00 : f32
    %193 = vector.broadcast %cst_72 : f32 to vector<8x128xf32>
    %194 = arith.addf %193, %192 : vector<8x128xf32>
    %cst_73 = arith.constant 0.000000e+00 : f32
    %195 = vector.broadcast %cst_73 : f32 to vector<8x128xf32>
    %196 = arith.maximumf %194, %195 : vector<8x128xf32>
    %cst_74 = arith.constant 1.000000e+00 : f32
    %197 = vector.broadcast %cst_74 : f32 to vector<8x128xf32>
    %198 = arith.divf %197, %196 : vector<8x128xf32>
    %199 = arith.mulf %198, %198 : vector<8x128xf32>
    %cst_75 = arith.constant -5.000000e-01 : f32
    %200 = vector.broadcast %cst_75 : f32 to vector<8x128xf32>
    %201 = arith.mulf %200, %188 : vector<8x128xf32>
    %cst_76 = arith.constant 1.000000e+00 : f32
    %202 = vector.broadcast %cst_76 : f32 to vector<8x128xf32>
    %203 = arith.addf %202, %201 : vector<8x128xf32>
    %cst_77 = arith.constant 0.000000e+00 : f32
    %204 = vector.broadcast %cst_77 : f32 to vector<8x128xf32>
    %205 = arith.maximumf %203, %204 : vector<8x128xf32>
    %cst_78 = arith.constant 1.000000e+00 : f32
    %206 = vector.broadcast %cst_78 : f32 to vector<8x128xf32>
    %207 = arith.divf %206, %205 : vector<8x128xf32>
    %208 = arith.mulf %207, %207 : vector<8x128xf32>
    %209 = arith.addf %199, %208 : vector<8x128xf32>
    %cst_79 = arith.constant -5.000000e-01 : f32
    %210 = vector.broadcast %cst_79 : f32 to vector<8x128xf32>
    %211 = arith.mulf %210, %189 : vector<8x128xf32>
    %cst_80 = arith.constant 1.000000e+00 : f32
    %212 = vector.broadcast %cst_80 : f32 to vector<8x128xf32>
    %213 = arith.addf %212, %211 : vector<8x128xf32>
    %cst_81 = arith.constant 0.000000e+00 : f32
    %214 = vector.broadcast %cst_81 : f32 to vector<8x128xf32>
    %215 = arith.maximumf %213, %214 : vector<8x128xf32>
    %cst_82 = arith.constant 1.000000e+00 : f32
    %216 = vector.broadcast %cst_82 : f32 to vector<8x128xf32>
    %217 = arith.divf %216, %215 : vector<8x128xf32>
    %218 = arith.mulf %217, %217 : vector<8x128xf32>
    %219 = arith.addf %209, %218 : vector<8x128xf32>
    %cst_83 = arith.constant -5.000000e-01 : f32
    %220 = vector.broadcast %cst_83 : f32 to vector<8x128xf32>
    %221 = arith.mulf %220, %190 : vector<8x128xf32>
    %cst_84 = arith.constant 1.000000e+00 : f32
    %222 = vector.broadcast %cst_84 : f32 to vector<8x128xf32>
    %223 = arith.addf %222, %221 : vector<8x128xf32>
    %cst_85 = arith.constant 0.000000e+00 : f32
    %224 = vector.broadcast %cst_85 : f32 to vector<8x128xf32>
    %225 = arith.maximumf %223, %224 : vector<8x128xf32>
    %cst_86 = arith.constant 1.000000e+00 : f32
    %226 = vector.broadcast %cst_86 : f32 to vector<8x128xf32>
    %227 = arith.divf %226, %225 : vector<8x128xf32>
    %228 = arith.mulf %227, %227 : vector<8x128xf32>
    %229 = arith.addf %219, %228 : vector<8x128xf32>
    %230 = math.rsqrt %229 : vector<8x128xf32>
    %231 = arith.mulf %11, %230 : vector<8x128xf32>
    %232 = arith.mulf %12, %230 : vector<8x128xf32>
    %233 = arith.mulf %13, %230 : vector<8x128xf32>
    %234 = arith.mulf %14, %230 : vector<8x128xf32>
    %cst_87 = arith.constant -5.000000e-01 : f32
    %235 = vector.broadcast %cst_87 : f32 to vector<8x128xf32>
    %236 = arith.mulf %235, %231 : vector<8x128xf32>
    %cst_88 = arith.constant 1.000000e+00 : f32
    %237 = vector.broadcast %cst_88 : f32 to vector<8x128xf32>
    %238 = arith.addf %237, %236 : vector<8x128xf32>
    %cst_89 = arith.constant 0.000000e+00 : f32
    %239 = vector.broadcast %cst_89 : f32 to vector<8x128xf32>
    %240 = arith.maximumf %238, %239 : vector<8x128xf32>
    %cst_90 = arith.constant 1.000000e+00 : f32
    %241 = vector.broadcast %cst_90 : f32 to vector<8x128xf32>
    %242 = arith.divf %241, %240 : vector<8x128xf32>
    %243 = arith.mulf %242, %242 : vector<8x128xf32>
    %cst_91 = arith.constant -5.000000e-01 : f32
    %244 = vector.broadcast %cst_91 : f32 to vector<8x128xf32>
    %245 = arith.mulf %244, %232 : vector<8x128xf32>
    %cst_92 = arith.constant 1.000000e+00 : f32
    %246 = vector.broadcast %cst_92 : f32 to vector<8x128xf32>
    %247 = arith.addf %246, %245 : vector<8x128xf32>
    %cst_93 = arith.constant 0.000000e+00 : f32
    %248 = vector.broadcast %cst_93 : f32 to vector<8x128xf32>
    %249 = arith.maximumf %247, %248 : vector<8x128xf32>
    %cst_94 = arith.constant 1.000000e+00 : f32
    %250 = vector.broadcast %cst_94 : f32 to vector<8x128xf32>
    %251 = arith.divf %250, %249 : vector<8x128xf32>
    %252 = arith.mulf %251, %251 : vector<8x128xf32>
    %253 = arith.addf %243, %252 : vector<8x128xf32>
    %cst_95 = arith.constant -5.000000e-01 : f32
    %254 = vector.broadcast %cst_95 : f32 to vector<8x128xf32>
    %255 = arith.mulf %254, %233 : vector<8x128xf32>
    %cst_96 = arith.constant 1.000000e+00 : f32
    %256 = vector.broadcast %cst_96 : f32 to vector<8x128xf32>
    %257 = arith.addf %256, %255 : vector<8x128xf32>
    %cst_97 = arith.constant 0.000000e+00 : f32
    %258 = vector.broadcast %cst_97 : f32 to vector<8x128xf32>
    %259 = arith.maximumf %257, %258 : vector<8x128xf32>
    %cst_98 = arith.constant 1.000000e+00 : f32
    %260 = vector.broadcast %cst_98 : f32 to vector<8x128xf32>
    %261 = arith.divf %260, %259 : vector<8x128xf32>
    %262 = arith.mulf %261, %261 : vector<8x128xf32>
    %263 = arith.addf %253, %262 : vector<8x128xf32>
    %cst_99 = arith.constant -5.000000e-01 : f32
    %264 = vector.broadcast %cst_99 : f32 to vector<8x128xf32>
    %265 = arith.mulf %264, %234 : vector<8x128xf32>
    %cst_100 = arith.constant 1.000000e+00 : f32
    %266 = vector.broadcast %cst_100 : f32 to vector<8x128xf32>
    %267 = arith.addf %266, %265 : vector<8x128xf32>
    %cst_101 = arith.constant 0.000000e+00 : f32
    %268 = vector.broadcast %cst_101 : f32 to vector<8x128xf32>
    %269 = arith.maximumf %267, %268 : vector<8x128xf32>
    %cst_102 = arith.constant 1.000000e+00 : f32
    %270 = vector.broadcast %cst_102 : f32 to vector<8x128xf32>
    %271 = arith.divf %270, %269 : vector<8x128xf32>
    %272 = arith.mulf %271, %271 : vector<8x128xf32>
    %273 = arith.addf %263, %272 : vector<8x128xf32>
    %274 = math.sqrt %273 : vector<8x128xf32>
    %cst_103 = arith.constant 1.000000e+00 : f32
    %275 = vector.broadcast %cst_103 : f32 to vector<8x128xf32>
    %276 = arith.subf %274, %275 : vector<8x128xf32>
    %cst_104 = arith.constant 5.000000e-01 : f32
    %277 = vector.broadcast %cst_104 : f32 to vector<8x128xf32>
    %278 = arith.divf %276, %277 : vector<8x128xf32>
    %279 = arith.subf %11, %278 : vector<8x128xf32>
    %cst_105 = arith.constant -5.000000e-01 : f32
    %280 = vector.broadcast %cst_105 : f32 to vector<8x128xf32>
    %281 = arith.mulf %280, %279 : vector<8x128xf32>
    %cst_106 = arith.constant 1.000000e+00 : f32
    %282 = vector.broadcast %cst_106 : f32 to vector<8x128xf32>
    %283 = arith.addf %282, %281 : vector<8x128xf32>
    %cst_107 = arith.constant 0.000000e+00 : f32
    %284 = vector.broadcast %cst_107 : f32 to vector<8x128xf32>
    %285 = arith.maximumf %283, %284 : vector<8x128xf32>
    %cst_108 = arith.constant 1.000000e+00 : f32
    %286 = vector.broadcast %cst_108 : f32 to vector<8x128xf32>
    %287 = arith.divf %286, %285 : vector<8x128xf32>
    %288 = arith.mulf %287, %287 : vector<8x128xf32>
    %289 = arith.subf %12, %278 : vector<8x128xf32>
    %cst_109 = arith.constant -5.000000e-01 : f32
    %290 = vector.broadcast %cst_109 : f32 to vector<8x128xf32>
    %291 = arith.mulf %290, %289 : vector<8x128xf32>
    %cst_110 = arith.constant 1.000000e+00 : f32
    %292 = vector.broadcast %cst_110 : f32 to vector<8x128xf32>
    %293 = arith.addf %292, %291 : vector<8x128xf32>
    %cst_111 = arith.constant 0.000000e+00 : f32
    %294 = vector.broadcast %cst_111 : f32 to vector<8x128xf32>
    %295 = arith.maximumf %293, %294 : vector<8x128xf32>
    %cst_112 = arith.constant 1.000000e+00 : f32
    %296 = vector.broadcast %cst_112 : f32 to vector<8x128xf32>
    %297 = arith.divf %296, %295 : vector<8x128xf32>
    %298 = arith.mulf %297, %297 : vector<8x128xf32>
    %299 = arith.subf %13, %278 : vector<8x128xf32>
    %cst_113 = arith.constant -5.000000e-01 : f32
    %300 = vector.broadcast %cst_113 : f32 to vector<8x128xf32>
    %301 = arith.mulf %300, %299 : vector<8x128xf32>
    %cst_114 = arith.constant 1.000000e+00 : f32
    %302 = vector.broadcast %cst_114 : f32 to vector<8x128xf32>
    %303 = arith.addf %302, %301 : vector<8x128xf32>
    %cst_115 = arith.constant 0.000000e+00 : f32
    %304 = vector.broadcast %cst_115 : f32 to vector<8x128xf32>
    %305 = arith.maximumf %303, %304 : vector<8x128xf32>
    %cst_116 = arith.constant 1.000000e+00 : f32
    %306 = vector.broadcast %cst_116 : f32 to vector<8x128xf32>
    %307 = arith.divf %306, %305 : vector<8x128xf32>
    %308 = arith.mulf %307, %307 : vector<8x128xf32>
    %309 = arith.subf %14, %278 : vector<8x128xf32>
    %cst_117 = arith.constant -5.000000e-01 : f32
    %310 = vector.broadcast %cst_117 : f32 to vector<8x128xf32>
    %311 = arith.mulf %310, %309 : vector<8x128xf32>
    %cst_118 = arith.constant 1.000000e+00 : f32
    %312 = vector.broadcast %cst_118 : f32 to vector<8x128xf32>
    %313 = arith.addf %312, %311 : vector<8x128xf32>
    %cst_119 = arith.constant 0.000000e+00 : f32
    %314 = vector.broadcast %cst_119 : f32 to vector<8x128xf32>
    %315 = arith.maximumf %313, %314 : vector<8x128xf32>
    %cst_120 = arith.constant 1.000000e+00 : f32
    %316 = vector.broadcast %cst_120 : f32 to vector<8x128xf32>
    %317 = arith.divf %316, %315 : vector<8x128xf32>
    %318 = arith.mulf %317, %317 : vector<8x128xf32>
    %319 = math.sqrt %288 : vector<8x128xf32>
    %320 = math.sqrt %298 : vector<8x128xf32>
    %321 = math.sqrt %308 : vector<8x128xf32>
    %322 = math.sqrt %318 : vector<8x128xf32>
    %cst_121 = arith.constant 1.000000e+00 : f32
    %323 = vector.broadcast %cst_121 : f32 to vector<8x128xf32>
    %324 = arith.subf %319, %323 : vector<8x128xf32>
    %cst_122 = arith.constant 2.000000e+00 : f32
    %325 = vector.broadcast %cst_122 : f32 to vector<8x128xf32>
    %326 = arith.mulf %324, %325 : vector<8x128xf32>
    %cst_123 = arith.constant 1.000000e+00 : f32
    %327 = vector.broadcast %cst_123 : f32 to vector<8x128xf32>
    %328 = arith.subf %320, %327 : vector<8x128xf32>
    %cst_124 = arith.constant 2.000000e+00 : f32
    %329 = vector.broadcast %cst_124 : f32 to vector<8x128xf32>
    %330 = arith.mulf %328, %329 : vector<8x128xf32>
    %cst_125 = arith.constant 1.000000e+00 : f32
    %331 = vector.broadcast %cst_125 : f32 to vector<8x128xf32>
    %332 = arith.subf %321, %331 : vector<8x128xf32>
    %cst_126 = arith.constant 2.000000e+00 : f32
    %333 = vector.broadcast %cst_126 : f32 to vector<8x128xf32>
    %334 = arith.mulf %332, %333 : vector<8x128xf32>
    %cst_127 = arith.constant 1.000000e+00 : f32
    %335 = vector.broadcast %cst_127 : f32 to vector<8x128xf32>
    %336 = arith.subf %322, %335 : vector<8x128xf32>
    %cst_128 = arith.constant 2.000000e+00 : f32
    %337 = vector.broadcast %cst_128 : f32 to vector<8x128xf32>
    %338 = arith.mulf %336, %337 : vector<8x128xf32>
    %339 = arith.mulf %288, %319 : vector<8x128xf32>
    %cst_129 = arith.constant 0.666666686 : f32
    %340 = vector.broadcast %cst_129 : f32 to vector<8x128xf32>
    %341 = arith.mulf %339, %340 : vector<8x128xf32>
    %342 = arith.mulf %298, %320 : vector<8x128xf32>
    %cst_130 = arith.constant 0.666666686 : f32
    %343 = vector.broadcast %cst_130 : f32 to vector<8x128xf32>
    %344 = arith.mulf %342, %343 : vector<8x128xf32>
    %345 = arith.mulf %308, %321 : vector<8x128xf32>
    %cst_131 = arith.constant 0.666666686 : f32
    %346 = vector.broadcast %cst_131 : f32 to vector<8x128xf32>
    %347 = arith.mulf %345, %346 : vector<8x128xf32>
    %348 = arith.mulf %318, %322 : vector<8x128xf32>
    %cst_132 = arith.constant 0.666666686 : f32
    %349 = vector.broadcast %cst_132 : f32 to vector<8x128xf32>
    %350 = arith.mulf %348, %349 : vector<8x128xf32>
    %c0_133 = arith.constant 0 : index
    %c0_134 = arith.constant 0 : index
    %351 = vector.load %arg2[%c0_133, %c0_134] : memref<8x128xi32, #tpu.memory_space<vmem>>, vector<8x128xi32>
    %cst_135 = arith.constant -0.685846805 : f32
    %352 = vector.broadcast %cst_135 : f32 to vector<8x128xf32>
    %c0_i32 = arith.constant 0 : i32
    %353 = vector.broadcast %c0_i32 : i32 to vector<8x128xi32>
    %354 = arith.cmpi eq, %351, %353 : vector<8x128xi32>
    %cst_136 = arith.constant 9.900000e-01 : f32
    %cst_137 = arith.constant 0.00333333341 : f32
    %355 = vector.broadcast %cst_136 : f32 to vector<8x128xf32>
    %356 = vector.broadcast %cst_137 : f32 to vector<8x128xf32>
    %357 = arith.select %354, %355, %356 : vector<8x128xi1>, vector<8x128xf32>
    %358 = arith.mulf %357, %326 : vector<8x128xf32>
    %359 = arith.subf %352, %358 : vector<8x128xf32>
    %360 = arith.addf %359, %341 : vector<8x128xf32>
    %c1_i32 = arith.constant 1 : i32
    %361 = vector.broadcast %c1_i32 : i32 to vector<8x128xi32>
    %362 = arith.cmpi eq, %351, %361 : vector<8x128xi32>
    %cst_138 = arith.constant 9.900000e-01 : f32
    %cst_139 = arith.constant 0.00333333341 : f32
    %363 = vector.broadcast %cst_138 : f32 to vector<8x128xf32>
    %364 = vector.broadcast %cst_139 : f32 to vector<8x128xf32>
    %365 = arith.select %362, %363, %364 : vector<8x128xi1>, vector<8x128xf32>
    %366 = arith.mulf %365, %330 : vector<8x128xf32>
    %367 = arith.subf %360, %366 : vector<8x128xf32>
    %368 = arith.addf %367, %344 : vector<8x128xf32>
    %c2_i32 = arith.constant 2 : i32
    %369 = vector.broadcast %c2_i32 : i32 to vector<8x128xi32>
    %370 = arith.cmpi eq, %351, %369 : vector<8x128xi32>
    %cst_140 = arith.constant 9.900000e-01 : f32
    %cst_141 = arith.constant 0.00333333341 : f32
    %371 = vector.broadcast %cst_140 : f32 to vector<8x128xf32>
    %372 = vector.broadcast %cst_141 : f32 to vector<8x128xf32>
    %373 = arith.select %370, %371, %372 : vector<8x128xi1>, vector<8x128xf32>
    %374 = arith.mulf %373, %334 : vector<8x128xf32>
    %375 = arith.subf %368, %374 : vector<8x128xf32>
    %376 = arith.addf %375, %347 : vector<8x128xf32>
    %c3_i32 = arith.constant 3 : i32
    %377 = vector.broadcast %c3_i32 : i32 to vector<8x128xi32>
    %378 = arith.cmpi eq, %351, %377 : vector<8x128xi32>
    %cst_142 = arith.constant 9.900000e-01 : f32
    %cst_143 = arith.constant 0.00333333341 : f32
    %379 = vector.broadcast %cst_142 : f32 to vector<8x128xf32>
    %380 = vector.broadcast %cst_143 : f32 to vector<8x128xf32>
    %381 = arith.select %378, %379, %380 : vector<8x128xi1>, vector<8x128xf32>
    %382 = arith.mulf %381, %338 : vector<8x128xf32>
    %383 = arith.subf %376, %382 : vector<8x128xf32>
    %384 = arith.addf %383, %350 : vector<8x128xf32>
    %385 = tpu.iota {dimensions = array<i32: 0>} : vector<8x128xi32>
    %386 = tpu.iota {dimensions = array<i32: 1>} : vector<8x128xi32>
    %c8_i32 = arith.constant 8 : i32
    %387 = arith.muli %arg0, %c8_i32 : i32
    %388 = vector.broadcast %387 : i32 to vector<8x128xi32>
    %389 = arith.addi %388, %385 : vector<8x128xi32>
    %c128_i32 = arith.constant 128 : i32
    %390 = vector.broadcast %c128_i32 : i32 to vector<8x128xi32>
    %391 = arith.muli %389, %390 : vector<8x128xi32>
    %392 = arith.addi %391, %386 : vector<8x128xi32>
    %c512_i32 = arith.constant 512 : i32
    %393 = vector.broadcast %c512_i32 : i32 to vector<8x128xi32>
    %394 = arith.cmpi slt, %392, %393 : vector<8x128xi32>
    %cst_144 = arith.constant 0.000000e+00 : f32
    %395 = vector.broadcast %cst_144 : f32 to vector<8x128xf32>
    %396 = arith.select %394, %384, %395 : vector<8x128xi1>, vector<8x128xf32>
    %397 = vector.shape_cast %396 : vector<8x128xf32> to vector<1x8x128xf32>
    %cst_145 = arith.constant dense<0.000000e+00> : vector<8x128xf32>
    %398 = vector.multi_reduction <add>, %397, %cst_145 [0] : vector<1x8x128xf32> to vector<8x128xf32>
    %c0_146 = arith.constant 0 : index
    %c0_147 = arith.constant 0 : index
    %399 = vector.load %arg3[%c0_146, %c0_147] : memref<8x128xf32, #tpu.memory_space<vmem>>, vector<8x128xf32>
    tpu.vector_store %arg3[%c0_146, %c0_147], %398 {strides = array<i32>} : memref<8x128xf32, #tpu.memory_space<vmem>>, vector<8x128xf32>,
    return
  }
  func.func @transform_0(%arg0: i32) -> (i32, i32, i32) {
    %c0_i32 = arith.constant 0 : i32
    %c0_i32_0 = arith.constant 0 : i32
    %c0_i32_1 = arith.constant 0 : i32
    return %c0_i32, %arg0, %c0_i32_0 : i32, i32, i32
  }
  func.func @transform_1(%arg0: i32) -> (i32, i32) {
    %c0_i32 = arith.constant 0 : i32
    %c0_i32_0 = arith.constant 0 : i32
    return %arg0, %c0_i32 : i32, i32
  }
  func.func @transform_2(%arg0: i32) -> (i32, i32) {
    %c0_i32 = arith.constant 0 : i32
    %c0_i32_0 = arith.constant 0 : i32
    return %arg0, %c0_i32 : i32, i32
  }
}

</mosaic_0001>

<bundles_post_ra>
// kernel: a_call__.1
= control target key start
LH: loop header
LB: loop body
LE: loop exit
PB: predicated region body
PF: predicated region fallthrough
CT: control target
= control target key end

     0   :  { %s502_s0 = inlined_call_operand.vmem [shape: f32[4,8,128], index: 0, kind: input, shape index: {}]   ;;  %s503_s1 = inlined_call_operand.vmem [shape: s32[8,128], index: 1, kind: input, shape index: {}]   ;;  %s504_s2 = inlined_call_operand.vmem [shape: f32[8,128], index: 2, kind: output, shape index: {}]  }
   0x1   :  { %v11_v0 = vld [vmem:[%s502_s0] sm:$0xff]  ;;  %v332_v1 = vld [vmem:[%s502_s0 + $0x8] sm:$0xff]  ;;  %v333_v2 = vld [vmem:[%s502_s0 + $0x10] sm:$0xff] }
   0x2   :  { %v18_v3 = vmax.f32 %v11_v0, %v332_v1  ;;  %v334_v4 = vld [vmem:[%s502_s0 + $0x18] sm:$0xff] }
   0x4   :  { %v19_v5 = vmax.f32 %v18_v3, %v333_v2 }
   0x6   :  { %v20_v6 = vmax.f32 %v19_v5, %v334_v4 }
   0x8   :  { %v445_v7 = vsub.f32 %v11_v0, %v20_v6  ;;  %v447_v8 = vsub.f32 %v332_v1, %v20_v6  ;;  %v449_v9 = vsub.f32 %v333_v2, %v20_v6  ;;  %v451_v10 = vsub.f32 %v334_v4, %v20_v6 }
   0xa   :  { %v25_v11 = vmul.f32 -0.5, %v445_v7  ;;  %v31_v12 = vmul.f32 -0.5, %v447_v8  ;;  %v38_v13 = vmul.f32 -0.5, %v449_v9  ;;  %v45_v14 = vmul.f32 -0.5, %v451_v10 }
   0xc   :  { %v26_v15 = vadd.f32 1.0, %v25_v11  ;;  %v32_v16 = vadd.f32 1.0, %v31_v12  ;;  %v39_v17 = vadd.f32 1.0, %v38_v13  ;;  %v46_v18 = vadd.f32 1.0, %v45_v14 }
   0xe   :  { %v27_v19 = vmax.f32 %v26_v15, 0.0  ;;  %v33_v20 = vmax.f32 %v32_v16, 0.0  ;;  %v40_v21 = vmax.f32 %v39_v17, 0.0  ;;  %v47_v22 = vmax.f32 %v46_v18, 0.0 }
  0x10   :  { %341 = vrcp.f32 %v27_v19 }
  0x11   :  { %343 = vrcp.f32 %v33_v20 }
  0x12   :  { %345 = vrcp.f32 %v40_v21 }
  0x13   :  { %347 = vrcp.f32 %v47_v22 }
  0x1a   :  { %v342_v23 = vpop.eup %341 }
  0x1b   :  { %v344_v24 = vpop.eup %343  ;;  %v30_v25 = vmul.f32 %v342_v23, %v342_v23 }
  0x1c   :  { %v346_v26 = vpop.eup %345  ;;  %v36_v27 = vmul.f32 %v344_v24, %v344_v24 }
  0x1d   :  { %v348_v28 = vpop.eup %347  ;;  %v43_v29 = vmul.f32 %v346_v26, %v346_v26 }
  0x1e   :  { %v37_v30 = vadd.f32 %v36_v27, %v30_v25  ;;  %v50_v31 = vmul.f32 %v348_v28, %v348_v28 }
  0x20   :  { %v44_v32 = vadd.f32 %v43_v29, %v37_v30 }
  0x22   :  { %v51_v33 = vadd.f32 %v50_v31, %v44_v32 }
  0x24   :  { %349 = vrsqrt.f32 %v51_v33 }
  0x2e   :  { %v350_v34 = vpop.eup %349 }
  0x2f   :  { %v53_v35 = vmul.f32 %v350_v34, %v445_v7  ;;  %v54_v36 = vmul.f32 %v350_v34, %v447_v8  ;;  %v55_v37 = vmul.f32 %v350_v34, %v449_v9  ;;  %v56_v38 = vmul.f32 %v350_v34, %v451_v10 }
  0x31   :  { %v57_v39 = vmul.f32 -0.5, %v53_v35  ;;  %v63_v40 = vmul.f32 -0.5, %v54_v36  ;;  %v70_v41 = vmul.f32 -0.5, %v55_v37  ;;  %v77_v42 = vmul.f32 -0.5, %v56_v38 }
  0x33   :  { %v58_v43 = vadd.f32 1.0, %v57_v39  ;;  %v64_v44 = vadd.f32 1.0, %v63_v40  ;;  %v71_v45 = vadd.f32 1.0, %v70_v41  ;;  %v78_v46 = vadd.f32 1.0, %v77_v42 }
  0x35   :  { %v59_v47 = vmax.f32 %v58_v43, 0.0  ;;  %v65_v48 = vmax.f32 %v64_v44, 0.0  ;;  %v72_v49 = vmax.f32 %v71_v45, 0.0  ;;  %v79_v50 = vmax.f32 %v78_v46, 0.0 }
  0x37   :  { %351 = vrcp.f32 %v59_v47 }
  0x38   :  { %353 = vrcp.f32 %v65_v48 }
  0x39   :  { %355 = vrcp.f32 %v72_v49 }
  0x3a   :  { %357 = vrcp.f32 %v79_v50 }
  0x41   :  { %v352_v51 = vpop.eup %351 }
  0x42   :  { %v354_v52 = vpop.eup %353  ;;  %v62_v53 = vmul.f32 %v352_v51, %v352_v51 }
  0x43   :  { %v356_v54 = vpop.eup %355  ;;  %v68_v55 = vmul.f32 %v354_v52, %v354_v52 }
  0x44   :  { %v358_v56 = vpop.eup %357  ;;  %v75_v57 = vmul.f32 %v356_v54, %v356_v54 }
  0x45   :  { %v69_v58 = vadd.f32 %v68_v55, %v62_v53  ;;  %v82_v59 = vmul.f32 %v358_v56, %v358_v56 }
  0x47   :  { %v76_v60 = vadd.f32 %v75_v57, %v69_v58 }
  0x49   :  { %v83_v61 = vadd.f32 %v82_v59, %v76_v60 }
  0x4b   :  { %359 = vrsqrt.f32 %v83_v61 }
  0x55   :  { %v360_v62 = vpop.eup %359 }
  0x56   :  { %v85_v63 = vmul.f32 %v360_v62, %v445_v7  ;;  %v86_v0 = vmul.f32 %v360_v62, %v447_v8  ;;  %v87_v1 = vmul.f32 %v360_v62, %v449_v9  ;;  %v88_v2 = vmul.f32 %v360_v62, %v451_v10 }
  0x58   :  { %v89_v3 = vmul.f32 -0.5, %v85_v63  ;;  %v95_v4 = vmul.f32 -0.5, %v86_v0  ;;  %v102_v5 = vmul.f32 -0.5, %v87_v1  ;;  %v109_v6 = vmul.f32 -0.5, %v88_v2 }
  0x5a   :  { %v90_v11 = vadd.f32 1.0, %v89_v3  ;;  %v96_v12 = vadd.f32 1.0, %v95_v4  ;;  %v103_v13 = vadd.f32 1.0, %v102_v5  ;;  %v110_v14 = vadd.f32 1.0, %v109_v6 }
  0x5c   :  { %v91_v15 = vmax.f32 %v90_v11, 0.0  ;;  %v97_v16 = vmax.f32 %v96_v12, 0.0  ;;  %v104_v17 = vmax.f32 %v103_v13, 0.0  ;;  %v111_v18 = vmax.f32 %v110_v14, 0.0 }
  0x5e   :  { %361 = vrcp.f32 %v91_v15 }
  0x5f   :  { %363 = vrcp.f32 %v97_v16 }
  0x60   :  { %365 = vrcp.f32 %v104_v17 }
  0x61   :  { %367 = vrcp.f32 %v111_v18 }
  0x68   :  { %v362_v19 = vpop.eup %361 }
  0x69   :  { %v364_v20 = vpop.eup %363  ;;  %v94_v21 = vmul.f32 %v362_v19, %v362_v19 }
  0x6a   :  { %v366_v22 = vpop.eup %365  ;;  %v100_v23 = vmul.f32 %v364_v20, %v364_v20 }
  0x6b   :  { %v368_v24 = vpop.eup %367  ;;  %v107_v25 = vmul.f32 %v366_v22, %v366_v22 }
  0x6c   :  { %v101_v26 = vadd.f32 %v100_v23, %v94_v21  ;;  %v114_v27 = vmul.f32 %v368_v24, %v368_v24 }
  0x6e   :  { %v108_v28 = vadd.f32 %v107_v25, %v101_v26 }
  0x70   :  { %v115_v29 = vadd.f32 %v114_v27, %v108_v28 }
  0x72   :  { %369 = vrsqrt.f32 %v115_v29 }
  0x7c   :  { %v370_v30 = vpop.eup %369 }
  0x7d   :  { %v117_v31 = vmul.f32 %v370_v30, %v445_v7  ;;  %v118_v32 = vmul.f32 %v370_v30, %v447_v8  ;;  %v119_v33 = vmul.f32 %v370_v30, %v449_v9  ;;  %v120_v34 = vmul.f32 %v370_v30, %v451_v10 }
  0x7f   :  { %v121_v35 = vmul.f32 -0.5, %v117_v31  ;;  %v127_v36 = vmul.f32 -0.5, %v118_v32  ;;  %v134_v37 = vmul.f32 -0.5, %v119_v33  ;;  %v141_v38 = vmul.f32 -0.5, %v120_v34 }
  0x81   :  { %v122_v39 = vadd.f32 1.0, %v121_v35  ;;  %v128_v40 = vadd.f32 1.0, %v127_v36  ;;  %v135_v41 = vadd.f32 1.0, %v134_v37  ;;  %v142_v42 = vadd.f32 1.0, %v141_v38 }
  0x83   :  { %v123_v43 = vmax.f32 %v122_v39, 0.0  ;;  %v129_v44 = vmax.f32 %v128_v40, 0.0  ;;  %v136_v45 = vmax.f32 %v135_v41, 0.0  ;;  %v143_v46 = vmax.f32 %v142_v42, 0.0 }
  0x85   :  { %371 = vrcp.f32 %v123_v43 }
  0x86   :  { %373 = vrcp.f32 %v129_v44 }
  0x87   :  { %375 = vrcp.f32 %v136_v45 }
  0x88   :  { %377 = vrcp.f32 %v143_v46 }
  0x8f   :  { %v372_v47 = vpop.eup %371 }
  0x90   :  { %v374_v48 = vpop.eup %373  ;;  %v126_v49 = vmul.f32 %v372_v47, %v372_v47 }
  0x91   :  { %v376_v50 = vpop.eup %375  ;;  %v132_v51 = vmul.f32 %v374_v48, %v374_v48 }
  0x92   :  { %v378_v52 = vpop.eup %377  ;;  %v139_v53 = vmul.f32 %v376_v50, %v376_v50 }
  0x93   :  { %v133_v54 = vadd.f32 %v132_v51, %v126_v49  ;;  %v146_v55 = vmul.f32 %v378_v52, %v378_v52 }
  0x95   :  { %v140_v56 = vadd.f32 %v139_v53, %v133_v54 }
  0x97   :  { %v147_v57 = vadd.f32 %v146_v55, %v140_v56 }
  0x99   :  { %379 = vrsqrt.f32 %v147_v57 }
  0xa3   :  { %v380_v58 = vpop.eup %379 }
  0xa4   :  { %v149_v59 = vmul.f32 %v380_v58, %v445_v7  ;;  %v150_v60 = vmul.f32 %v380_v58, %v447_v8  ;;  %v151_v61 = vmul.f32 %v380_v58, %v449_v9  ;;  %v152_v62 = vmul.f32 %v380_v58, %v451_v10 }
  0xa6   :  { %v153_v63 = vmul.f32 -0.5, %v149_v59  ;;  %v159_v0 = vmul.f32 -0.5, %v150_v60  ;;  %v166_v1 = vmul.f32 -0.5, %v151_v61  ;;  %v173_v2 = vmul.f32 -0.5, %v152_v62 }
  0xa8   :  { %v154_v3 = vadd.f32 1.0, %v153_v63  ;;  %v160_v4 = vadd.f32 1.0, %v159_v0  ;;  %v167_v5 = vadd.f32 1.0, %v166_v1  ;;  %v174_v6 = vadd.f32 1.0, %v173_v2 }
  0xaa   :  { %v155_v11 = vmax.f32 %v154_v3, 0.0  ;;  %v161_v12 = vmax.f32 %v160_v4, 0.0  ;;  %v168_v13 = vmax.f32 %v167_v5, 0.0  ;;  %v175_v14 = vmax.f32 %v174_v6, 0.0 }
  0xac   :  { %381 = vrcp.f32 %v155_v11 }
  0xad   :  { %383 = vrcp.f32 %v161_v12 }
  0xae   :  { %385 = vrcp.f32 %v168_v13 }
  0xaf   :  { %387 = vrcp.f32 %v175_v14 }
  0xb6   :  { %v382_v15 = vpop.eup %381 }
  0xb7   :  { %v384_v16 = vpop.eup %383  ;;  %v158_v17 = vmul.f32 %v382_v15, %v382_v15 }
  0xb8   :  { %v386_v18 = vpop.eup %385  ;;  %v164_v19 = vmul.f32 %v384_v16, %v384_v16 }
  0xb9   :  { %v388_v20 = vpop.eup %387  ;;  %v171_v21 = vmul.f32 %v386_v18, %v386_v18 }
  0xba   :  { %v165_v22 = vadd.f32 %v164_v19, %v158_v17  ;;  %v178_v23 = vmul.f32 %v388_v20, %v388_v20 }
  0xbc   :  { %v172_v24 = vadd.f32 %v171_v21, %v165_v22  ;;  %v294_v21 = vld [vmem:[%s503_s1] sm:$0xff] }
  0xbd   :  { %vm295_vm2 = vcmp.eq.s32.totalorder %v294_v21, 0  ;;  %vm300_vm5 = vcmp.eq.s32.totalorder %v294_v21, 1  ;;  %vm305_vm12 = vcmp.eq.s32.totalorder %v294_v21, 2  ;;  %vm310_vm13 = vcmp.eq.s32.totalorder %v294_v21, 3 }
  0xbe   :  { %v179_v25 = vadd.f32 %v178_v23, %v172_v24 }
  0xc0   :  { %389 = vrsqrt.f32 %v179_v25 }
  0xca   :  { %v390_v26 = vpop.eup %389 }
  0xcb   :  { %v181_v27 = vmul.f32 %v390_v26, %v445_v7  ;;  %v182_v28 = vmul.f32 %v390_v26, %v447_v8  ;;  %v183_v29 = vmul.f32 %v390_v26, %v449_v9  ;;  %v184_v30 = vmul.f32 %v390_v26, %v451_v10 }
  0xcd   :  { %v185_v31 = vmul.f32 -0.5, %v181_v27  ;;  %v191_v32 = vmul.f32 -0.5, %v182_v28  ;;  %v198_v33 = vmul.f32 -0.5, %v183_v29  ;;  %v205_v34 = vmul.f32 -0.5, %v184_v30 }
  0xcf   :  { %v186_v35 = vadd.f32 1.0, %v185_v31  ;;  %v192_v36 = vadd.f32 1.0, %v191_v32  ;;  %v199_v37 = vadd.f32 1.0, %v198_v33  ;;  %v206_v38 = vadd.f32 1.0, %v205_v34 }
  0xd1   :  { %v187_v39 = vmax.f32 %v186_v35, 0.0  ;;  %v193_v40 = vmax.f32 %v192_v36, 0.0  ;;  %v200_v41 = vmax.f32 %v199_v37, 0.0  ;;  %v207_v42 = vmax.f32 %v206_v38, 0.0 }
  0xd3   :  { %391 = vrcp.f32 %v187_v39 }
  0xd4   :  { %393 = vrcp.f32 %v193_v40 }
  0xd5   :  { %395 = vrcp.f32 %v200_v41 }
  0xd6   :  { %397 = vrcp.f32 %v207_v42 }
  0xdd   :  { %v392_v43 = vpop.eup %391 }
  0xde   :  { %v394_v44 = vpop.eup %393  ;;  %v190_v45 = vmul.f32 %v392_v43, %v392_v43 }
  0xdf   :  { %v396_v46 = vpop.eup %395  ;;  %v196_v47 = vmul.f32 %v394_v44, %v394_v44  ;;  %v417_v44 = vmov 0.0033333334  }
  0xe0   :  { %v398_v48 = vpop.eup %397  ;;  %v203_v49 = vmul.f32 %v396_v46, %v396_v46 }
  0xe1   :  { %v197_v50 = vadd.f32 %v196_v47, %v190_v45  ;;  %v210_v51 = vmul.f32 %v398_v48, %v398_v48  ;;  %v296_v45 = vsel %vm295_vm2, 0.99, %v417_v44 }
  0xe3   :  { %v204_v52 = vadd.f32 %v203_v49, %v197_v50  ;;  %v301_v50 = vsel %vm300_vm5, 0.99, %v417_v44 }
  0xe5   :  { %v211_v53 = vadd.f32 %v210_v51, %v204_v52  ;;  %v315_v51 = vlaneseq }
  0xe7   :  { %399 = vrsqrt.f32 %v211_v53  ;;  %vm214_vm0 = vcmp.eq.f32.partialorder %v211_v53, inf  ;;  %v217_v55 = vand.u32 2147483648, %v211_v53  ;;  %vm216_vm1 = vcmp.eq.f32.partialorder %v211_v53, 0.0 }
  0xf1   :  { %v400_v54 = vpop.eup %399 }
  0xf2   :  { %v213_v56 = vmul.f32 %v400_v54, %v211_v53 }
  0xf4   :  { %v215_v57 = vsel %vm214_vm0, %v211_v53, %v213_v56 }
  0xf5   :  { %v218_v58 = vsel %vm216_vm1, %v217_v55, %v215_v57 }
  0xf6   :  { %v335_v59 = vadd.f32 -1.0, %v218_v58 }
  0xf8   :  { %v221_v60 = vmul.f32 2.0, %v335_v59  ;;  %v306_v59 = vsel %vm305_vm12, 0.99, %v417_v44 }
  0xfa   :  { %v222_v61 = vsub.f32 %v445_v7, %v221_v60  ;;  %v229_v62 = vsub.f32 %v447_v8, %v221_v60  ;;  %v236_v63 = vsub.f32 %v449_v9, %v221_v60  ;;  %v243_v0 = vsub.f32 %v451_v10, %v221_v60 }
  0xfb   :  { %v316_v60 = vshrl.u32 %v315_v51, 7 }
  0xfc   :  { %v223_v1 = vmul.f32 -0.5, %v222_v61  ;;  %v230_v2 = vmul.f32 -0.5, %v229_v62  ;;  %v237_v3 = vmul.f32 -0.5, %v236_v63  ;;  %v244_v4 = vmul.f32 -0.5, %v243_v0 }
  0xfe   :  { %v224_v5 = vadd.f32 1.0, %v223_v1  ;;  %v231_v6 = vadd.f32 1.0, %v230_v2  ;;  %v238_v11 = vadd.f32 1.0, %v237_v3  ;;  %v245_v12 = vadd.f32 1.0, %v244_v4 }
  0xff   :  { %v311_v3 = vsel %vm310_vm13, 0.99, %v417_v44  ;;  %v318_v4 = vand.u32 127, %v315_v51 }
 0x100   :  { %v225_v13 = vmax.f32 %v224_v5, 0.0  ;;  %v232_v14 = vmax.f32 %v231_v6, 0.0  ;;  %v239_v15 = vmax.f32 %v238_v11, 0.0  ;;  %v246_v16 = vmax.f32 %v245_v12, 0.0 }
 0x101   :  { %v322_v5 = vmul.u32 128, %v316_v60 }
 0x102   :  { %401 = vrcp.f32 %v225_v13 }
 0x103   :  { %403 = vrcp.f32 %v232_v14 }
 0x104   :  { %405 = vrcp.f32 %v239_v15  ;;  %v323_v15 = vadd.s32 %v322_v5, %v318_v4 }
 0x105   :  { %407 = vrcp.f32 %v246_v16 }
 0x106   :  { %vm324_vm14 = vcmp.lt.s32.totalorder %v323_v15, 512 }
 0x10c   :  { %v402_v7 = vpop.eup %401 }
 0x10d   :  { %v404_v8 = vpop.eup %403  ;;  %v228_v9 = vmul.f32 %v402_v7, %v402_v7 }
 0x10e   :  { %v406_v10 = vpop.eup %405  ;;  %v235_v17 = vmul.f32 %v404_v8, %v404_v8 }
 0x10f   :  { %v408_v18 = vpop.eup %407  ;;  %v242_v19 = vmul.f32 %v406_v10, %v406_v10  ;;  %409 = vrsqrt.f32 %v228_v9  ;;  %vm252_vm3 = vcmp.eq.f32.partialorder %v228_v9, inf  ;;  %vm254_vm4 = vcmp.eq.f32.partialorder %v228_v9, 0.0 }
 0x110   :  { %v481_v20 = vmul.f32 %v408_v18, %v408_v18  ;;  %411 = vrsqrt.f32 %v235_v17  ;;  %v255_v23 = vand.u32 2147483648, %v228_v9  ;;  %vm259_vm6 = vcmp.eq.f32.partialorder %v235_v17, inf }
 0x111   :  { %413 = vrsqrt.f32 %v242_v19  ;;  %vm261_vm7 = vcmp.eq.f32.partialorder %v235_v17, 0.0  ;;  %v262_v26 = vand.u32 2147483648, %v235_v17  ;;  %vm266_vm8 = vcmp.eq.f32.partialorder %v242_v19, inf }
 0x112   :  { %415 = vrsqrt.f32 %v481_v20  ;;  %vm268_vm9 = vcmp.eq.f32.partialorder %v242_v19, 0.0  ;;  %v269_v29 = vand.u32 2147483648, %v242_v19  ;;  %vm273_vm10 = vcmp.eq.f32.partialorder %v481_v20, inf }
 0x113   :  { %vm275_vm11 = vcmp.eq.f32.partialorder %v481_v20, 0.0  ;;  %v276_v36 = vand.u32 2147483648, %v481_v20 }
 0x119   :  { %v410_v22 = vpop.eup %409 }
 0x11a   :  { %v412_v24 = vpop.eup %411  ;;  %v251_v25 = vmul.f32 %v410_v22, %v228_v9 }
 0x11b   :  { %v414_v27 = vpop.eup %413  ;;  %v258_v28 = vmul.f32 %v412_v24, %v235_v17 }
 0x11c   :  { %v416_v30 = vpop.eup %415  ;;  %v253_v31 = vsel %vm252_vm3, %v228_v9, %v251_v25  ;;  %v265_v32 = vmul.f32 %v414_v27, %v242_v19 }
 0x11d   :  { %v256_v33 = vsel %vm254_vm4, %v255_v23, %v253_v31  ;;  %v260_v34 = vsel %vm259_vm6, %v235_v17, %v258_v28  ;;  %v272_v35 = vmul.f32 %v416_v30, %v481_v20 }
 0x11e   :  { %v263_v37 = vsel %vm261_vm7, %v262_v26, %v260_v34  ;;  %v267_v38 = vsel %vm266_vm8, %v242_v19, %v265_v32  ;;  %v336_v39 = vadd.f32 -1.0, %v256_v33  ;;  %v286_v40 = vmul.f32 %v256_v33, %v228_v9 }
 0x11f   :  { %v270_v41 = vsel %vm268_vm9, %v269_v29, %v267_v38  ;;  %v274_v42 = vsel %vm273_vm10, %v481_v20, %v272_v35  ;;  %v337_v43 = vadd.f32 -1.0, %v263_v37  ;;  %v288_v53 = vmul.f32 %v263_v37, %v235_v17 }
 0x120   :  { %v279_v46 = vmul.f32 2.0, %v336_v39  ;;  %v338_v47 = vadd.f32 -1.0, %v270_v41  ;;  %v277_v48 = vsel %vm275_vm11, %v276_v36, %v274_v42  ;;  %v287_v52 = vmul.f32 0.6666667, %v286_v40 }
 0x121   :  { %v281_v49 = vmul.f32 2.0, %v337_v43  ;;  %v339_v56 = vadd.f32 -1.0, %v277_v48  ;;  %v289_v61 = vmul.f32 0.6666667, %v288_v53  ;;  %v290_v62 = vmul.f32 %v270_v41, %v242_v19 }
 0x122   :  { %v297_v54 = vmul.f32 %v296_v45, %v279_v46  ;;  %v283_v55 = vmul.f32 2.0, %v338_v47  ;;  %v292_v11 = vmul.f32 %v277_v48, %v481_v20 }
 0x123   :  { %v302_v58 = vmul.f32 %v301_v50, %v281_v49  ;;  %v285_v0 = vmul.f32 2.0, %v339_v56  ;;  %v291_v6 = vmul.f32 0.6666667, %v290_v62 }
 0x124   :  { %v298_v57 = vsub.f32 -0.6858468, %v297_v54  ;;  %v307_v2 = vmul.f32 %v306_v59, %v283_v55  ;;  %v293_v16 = vmul.f32 0.6666667, %v292_v11 }
 0x125   :  { %v312_v14 = vmul.f32 %v311_v3, %v285_v0 }
 0x126   :  { %v299_v63 = vadd.f32 %v298_v57, %v287_v52 }
 0x128   :  { %v303_v1 = vsub.f32 %v299_v63, %v302_v58 }
 0x12a   :  { %v304_v12 = vadd.f32 %v303_v1, %v289_v61 }
 0x12c   :  { %v308_v13 = vsub.f32 %v304_v12, %v307_v2 }
 0x12e   :  { %v309_v7 = vadd.f32 %v308_v13, %v291_v6 }
 0x130   :  { %v313_v8 = vsub.f32 %v309_v7, %v312_v14 }
 0x132   :  { %v314_v9 = vadd.f32 %v313_v8, %v293_v16 }
 0x134   :  { %v325_v10 = vsel %vm324_vm14, %v314_v9, 0.0 }
 0x135   :  { %327 = vst [vmem:[%s504_s2] sm:$0xff] %v325_v10 }

</bundles_post_ra>
